<compile_context>
chip_gen: v6e
topology: v6e:2x2x1
jax: 0.10.0
libtpu: 0.0.40
codegen_flags: <defaults>
</compile_context>

<pallas_src>
import jax
import jax.numpy as jnp
from jax.experimental import pallas as pl
from jax.experimental.pallas import tpu as pltpu


def _make_head_kernel(hw: int):
    inv_hw = 1.0 / float(hw)
    n_lane_groups = hw // 128 if hw % 128 == 0 else 0

    def kernel(x_ref, w_ref, b_ref, o_ref):
        # x_ref: (bn, C, H*W) feature tile; w_ref: (C, ncls_pad); b_ref: (1, ncls_pad).
        x = x_ref[...]
        if n_lane_groups >= 2:
            # Pre-sum 128-wide lane groups with VPU adds (static, 128-aligned
            # slices), then a single cross-lane reduce -> keeps v7x HBM-bound
            # instead of XLU-bound.
            acc = x[:, :, 0:128].astype(jnp.float32)
            for g in range(1, n_lane_groups):
                acc = acc + x[:, :, g * 128:(g + 1) * 128].astype(jnp.float32)
            pooled = jnp.sum(acc, axis=-1) * inv_hw                 # (bn, C)
        else:
            pooled = jnp.sum(x, axis=-1, dtype=jnp.float32) * inv_hw
        # Classification head on the MXU, fp32 accumulation.
        logits = jnp.dot(pooled, w_ref[...], preferred_element_type=jnp.float32)
        o_ref[...] = (logits + b_ref[...]).astype(o_ref.dtype)

    return kernel


def torchvision_wrapper_forward(features: jax.Array,
                                w: jax.Array,
                                b: jax.Array) -> jax.Array:
    """Pallas forward for TorchVisionWrapper's classification head.

    features: (N, C, H, W) backbone feature maps.
    w:        (C, n_classes) linear weight (transposed nn.Linear weight).
    b:        (n_classes,) or (1, n_classes) linear bias.
    returns:  (N, n_classes) fp32 logits.
    """
    n, c, h, wd = features.shape
    hw = h * wd
    n_classes = w.shape[1]
    b = b.reshape(1, -1)

    # Pad the class dim to a multiple of 128: unmasked full-lane output
    # stores and a clean MXU N dim; padded columns are sliced off below.
    ncls_pad = max(128, ((n_classes + 127) // 128) * 128)
    if ncls_pad != n_classes:
        w_p = jnp.pad(w, ((0, 0), (0, ncls_pad - n_classes)))
        b_p = jnp.pad(b, ((0, 0), (0, ncls_pad - n_classes)))
    else:
        w_p, b_p = w, b

    # Metadata-only reshape to a lane-dense 3-D slab: minor dim = H*W.
    x3d = features.reshape(n, c, hw)

    # ---- VMEM-aware batch tile ------------------------------------------
    itemsize = features.dtype.itemsize
    bytes_per_row = c * hw * itemsize
    target_block_bytes = 8 * 1024 * 1024          # 2x buffers = 16 MiB input
    bn = max(1, min(n, target_block_bytes // max(1, bytes_per_row)))
    # At least 2 grid steps for reasonable batches so megacore actually
    # shards and the software pipeline has something to overlap.
    if n >= 16:
        bn = min(bn, pl.cdiv(n, 2))
    # Round DOWN to a multiple of 8 (aligned output sublane dim); never
    # round up past the VMEM budget.  bn < 8 (huge rows / tiny batch) is
    # accepted: the output block is tiny, masked stores are fine.
    if bn >= 8:
        bn = (bn // 8) * 8
    bn = min(bn, n)

    grid = (pl.cdiv(n, bn),)
    out_dtype = jnp.promote_types(features.dtype, jnp.float32)

    flops = 2 * n * c * ncls_pad + n * c * hw + n * ncls_pad
    bytes_accessed = (x3d.size * x3d.dtype.itemsize
                      + w_p.size * w_p.dtype.itemsize
                      + b_p.size * b_p.dtype.itemsize
                      + n * ncls_pad * jnp.dtype(out_dtype).itemsize)

    kernel = _make_head_kernel(hw)

    def _build(weight_pipeline_mode):
        param_kwargs = ({} if weight_pipeline_mode is None
                        else dict(pipeline_mode=weight_pipeline_mode))
        return pl.pallas_call(
            kernel,
            out_shape=jax.ShapeDtypeStruct((n, ncls_pad), out_dtype),
            grid_spec=pl.GridSpec(
                grid=grid,
                in_specs=[
                    # Streaming feature tile: batch tiled, (C, H*W) = full dims.
                    pl.BlockSpec((bn, c, hw), lambda i: (i, 0, 0)),
                    # Weight / bias: constant block index -> fetched once,
                    # single-buffered when supported (VMEM headroom).
                    pl.BlockSpec((c, ncls_pad), lambda i: (0, 0), **param_kwargs),
                    pl.BlockSpec((1, ncls_pad), lambda i: (0, 0), **param_kwargs),
                ],
                out_specs=pl.BlockSpec((bn, ncls_pad), lambda i: (i, 0)),
            ),
            compiler_params=pltpu.CompilerParams(
                dimension_semantics=("parallel",),
                # Above the 16 MiB (v5e) / 32 MiB (v6e, v7x) scoped defaults,
                # below v7x's 64 MiB physical VMEM.
                vmem_limit_bytes=48 * 1024 * 1024,
            ),
            cost_estimate=pl.CostEstimate(
                flops=flops,
                transcendentals=0,
                bytes_accessed=bytes_accessed,
            ),
        )

    try:
        logits = _build(pl.Buffered(1))(x3d, w_p, b_p)
    except Exception:
        # Fallback: default double-buffered params (only costs VMEM headroom).
        logits = _build(None)(x3d, w_p, b_p)

    if ncls_pad != n_classes:
        logits = logits[:, :n_classes]
    return logits


if __name__ == "__main__":
    key = jax.random.PRNGKey(0)
    kx, kw, kb = jax.random.split(key, 3)

    # Small shapes: batch=2, backbone channels=32, spatial=16x16, n_classes=8
    # -- the pooled-feature -> Linear head the wrapper installs on the backbone.
    N, C, H, W = 2, 32, 16, 16
    n_classes = 8

    x = jax.random.normal(kx, (N, C, H, W), dtype=jnp.float32)
    w = jax.random.normal(kw, (C, n_classes), dtype=jnp.float32)
    b = jax.random.normal(kb, (1, n_classes), dtype=jnp.float32)

    y = torchvision_wrapper_forward(x, w, b)
    y = jax.block_until_ready(y)

    # Reference: global average pool + linear head.
    y_ref = x.mean(axis=(2, 3)) @ w + b

    assert y.shape == (N, n_classes)
    assert bool(jnp.allclose(y, y_ref, atol=1e-2, rtol=1e-2))

    print("KERNEL_OK")
</pallas_src>

<mosaic_0001>
module attributes {stable_mosaic.version = 11 : i64} {
  func.func @kernel(%arg0: i32, %arg1: memref<2x32x256xf32, #tpu.memory_space<vmem>>, %arg2: memref<32x128xf32, #tpu.memory_space<vmem>>, %arg3: memref<1x128xf32, #tpu.memory_space<vmem>>, %arg4: memref<2x128xf32, #tpu.memory_space<vmem>>) attributes {dimension_semantics = [#tpu.dimension_semantics<parallel>], iteration_bounds = array<i64: 1>, scalar_prefetch = 0 : i64, scratch_operands = 0 : i64, tpu.core_type = #tpu.core_type<tc>, window_params = [{transform_indices = @transform_0, window_bounds = array<i64: 2, 32, 256>}, {pipeline_mode = #tpu.pipeline_mode<synchronous>, transform_indices = @transform_1, window_bounds = array<i64: 32, 128>}, {pipeline_mode = #tpu.pipeline_mode<synchronous>, transform_indices = @transform_2, window_bounds = array<i64: 1, 128>}, {transform_indices = @transform_3, window_bounds = array<i64: 2, 128>}]} {
    %c0 = arith.constant 0 : index
    %c0_0 = arith.constant 0 : index
    %c0_1 = arith.constant 0 : index
    %0 = vector.load %arg1[%c0, %c0_0, %c0_1] : memref<2x32x256xf32, #tpu.memory_space<vmem>>, vector<2x32x256xf32>
    %1 = vector.extract_strided_slice %0 {offsets = [0, 0, 0], sizes = [2, 32, 128], strides = [1, 1, 1]} : vector<2x32x256xf32> to vector<2x32x128xf32>
    %2 = vector.extract_strided_slice %0 {offsets = [0, 0, 128], sizes = [2, 32, 128], strides = [1, 1, 1]} : vector<2x32x256xf32> to vector<2x32x128xf32>
    %3 = arith.addf %1, %2 : vector<2x32x128xf32>
    %cst = arith.constant dense<0.000000e+00> : vector<2x32xf32>
    %4 = vector.multi_reduction <add>, %3, %cst [2] : vector<2x32x128xf32> to vector<2x32xf32>
    %cst_2 = arith.constant 3.906250e-03 : f32
    %5 = vector.broadcast %cst_2 : f32 to vector<2x32xf32>
    %6 = arith.mulf %4, %5 : vector<2x32xf32>
    %c0_3 = arith.constant 0 : index
    %c0_4 = arith.constant 0 : index
    %7 = vector.load %arg2[%c0_3, %c0_4] : memref<32x128xf32, #tpu.memory_space<vmem>>, vector<32x128xf32>
    %cst_5 = arith.constant dense<0.000000e+00> : vector<2x128xf32>
    %8 = tpu.matmul %6, %7, %cst_5 {dimension_numbers = #tpu.dot_dimension_numbers<[1], [0], [0], [1], [0, 0, 1, 1], [], []>} : vector<2x32xf32>, vector<32x128xf32>, vector<2x128xf32> -> vector<2x128xf32>
    %c0_6 = arith.constant 0 : index
    %c0_7 = arith.constant 0 : index
    %9 = vector.load %arg3[%c0_6, %c0_7] : memref<1x128xf32, #tpu.memory_space<vmem>>, vector<1x128xf32>
    %10 = vector.broadcast %9 : vector<1x128xf32> to vector<2x128xf32>
    %11 = arith.addf %8, %10 : vector<2x128xf32>
    %c0_8 = arith.constant 0 : index
    %c0_9 = arith.constant 0 : index
    %12 = vector.load %arg4[%c0_8, %c0_9] : memref<2x128xf32, #tpu.memory_space<vmem>>, vector<2x128xf32>
    tpu.vector_store %arg4[%c0_8, %c0_9], %11 {strides = array<i32>} : memref<2x128xf32, #tpu.memory_space<vmem>>, vector<2x128xf32>,
    return
  }
  func.func @transform_0(%arg0: i32) -> (i32, i32, i32) {
    %c0_i32 = arith.constant 0 : i32
    %c0_i32_0 = arith.constant 0 : i32
    %c0_i32_1 = arith.constant 0 : i32
    return %arg0, %c0_i32, %c0_i32_0 : i32, i32, i32
  }
  func.func @transform_1(%arg0: i32) -> (i32, i32) {
    %c0_i32 = arith.constant 0 : i32
    %c0_i32_0 = arith.constant 0 : i32
    %c0_i32_1 = arith.constant 0 : i32
    return %c0_i32, %c0_i32_0 : i32, i32
  }
  func.func @transform_2(%arg0: i32) -> (i32, i32) {
    %c0_i32 = arith.constant 0 : i32
    %c0_i32_0 = arith.constant 0 : i32
    %c0_i32_1 = arith.constant 0 : i32
    return %c0_i32, %c0_i32_0 : i32, i32
  }
  func.func @transform_3(%arg0: i32) -> (i32, i32) {
    %c0_i32 = arith.constant 0 : i32
    %c0_i32_0 = arith.constant 0 : i32
    return %arg0, %c0_i32 : i32, i32
  }
}

module attributes {stable_mosaic.version = 11 : i64} {
  func.func @kernel(%arg0: i32, %arg1: memref<2x32x256xf32, #tpu.memory_space<vmem>>, %arg2: memref<32x128xf32, #tpu.memory_space<vmem>>, %arg3: memref<1x128xf32, #tpu.memory_space<vmem>>, %arg4: memref<2x128xf32, #tpu.memory_space<vmem>>) attributes {dimension_semantics = [#tpu.dimension_semantics<parallel>], iteration_bounds = array<i64: 1>, scalar_prefetch = 0 : i64, scratch_operands = 0 : i64, tpu.core_type = #tpu.core_type<tc>, window_params = [{transform_indices = @transform_0, window_bounds = array<i64: 2, 32, 256>}, {pipeline_mode = #tpu.pipeline_mode<synchronous>, transform_indices = @transform_1, window_bounds = array<i64: 32, 128>}, {pipeline_mode = #tpu.pipeline_mode<synchronous>, transform_indices = @transform_2, window_bounds = array<i64: 1, 128>}, {transform_indices = @transform_3, window_bounds = array<i64: 2, 128>}]} {
    %c0 = arith.constant 0 : index
    %c0_0 = arith.constant 0 : index
    %c0_1 = arith.constant 0 : index
    %0 = vector.load %arg1[%c0, %c0_0, %c0_1] : memref<2x32x256xf32, #tpu.memory_space<vmem>>, vector<2x32x256xf32>
    %1 = vector.extract_strided_slice %0 {offsets = [0, 0, 0], sizes = [2, 32, 128], strides = [1, 1, 1]} : vector<2x32x256xf32> to vector<2x32x128xf32>
    %2 = vector.extract_strided_slice %0 {offsets = [0, 0, 128], sizes = [2, 32, 128], strides = [1, 1, 1]} : vector<2x32x256xf32> to vector<2x32x128xf32>
    %3 = arith.addf %1, %2 : vector<2x32x128xf32>
    %cst = arith.constant dense<0.000000e+00> : vector<2x32xf32>
    %4 = vector.multi_reduction <add>, %3, %cst [2] : vector<2x32x128xf32> to vector<2x32xf32>
    %cst_2 = arith.constant 3.906250e-03 : f32
    %5 = vector.broadcast %cst_2 : f32 to vector<2x32xf32>
    %6 = arith.mulf %4, %5 : vector<2x32xf32>
    %c0_3 = arith.constant 0 : index
    %c0_4 = arith.constant 0 : index
    %7 = vector.load %arg2[%c0_3, %c0_4] : memref<32x128xf32, #tpu.memory_space<vmem>>, vector<32x128xf32>
    %cst_5 = arith.constant dense<0.000000e+00> : vector<2x128xf32>
    %8 = tpu.matmul %6, %7, %cst_5 {dimension_numbers = #tpu.dot_dimension_numbers<[1], [0], [0], [1], [0, 0, 1, 1], [], []>} : vector<2x32xf32>, vector<32x128xf32>, vector<2x128xf32> -> vector<2x128xf32>
    %c0_6 = arith.constant 0 : index
    %c0_7 = arith.constant 0 : index
    %9 = vector.load %arg3[%c0_6, %c0_7] : memref<1x128xf32, #tpu.memory_space<vmem>>, vector<1x128xf32>
    %10 = vector.broadcast %9 : vector<1x128xf32> to vector<2x128xf32>
    %11 = arith.addf %8, %10 : vector<2x128xf32>
    %c0_8 = arith.constant 0 : index
    %c0_9 = arith.constant 0 : index
    %12 = vector.load %arg4[%c0_8, %c0_9] : memref<2x128xf32, #tpu.memory_space<vmem>>, vector<2x128xf32>
    tpu.vector_store %arg4[%c0_8, %c0_9], %11 {strides = array<i32>} : memref<2x128xf32, #tpu.memory_space<vmem>>, vector<2x128xf32>,
    return
  }
  func.func @transform_0(%arg0: i32) -> (i32, i32, i32) {
    %c0_i32 = arith.constant 0 : i32
    %c0_i32_0 = arith.constant 0 : i32
    %c0_i32_1 = arith.constant 0 : i32
    return %arg0, %c0_i32, %c0_i32_0 : i32, i32, i32
  }
  func.func @transform_1(%arg0: i32) -> (i32, i32) {
    %c0_i32 = arith.constant 0 : i32
    %c0_i32_0 = arith.constant 0 : i32
    %c0_i32_1 = arith.constant 0 : i32
    return %c0_i32, %c0_i32_0 : i32, i32
  }
  func.func @transform_2(%arg0: i32) -> (i32, i32) {
    %c0_i32 = arith.constant 0 : i32
    %c0_i32_0 = arith.constant 0 : i32
    %c0_i32_1 = arith.constant 0 : i32
    return %c0_i32, %c0_i32_0 : i32, i32
  }
  func.func @transform_3(%arg0: i32) -> (i32, i32) {
    %c0_i32 = arith.constant 0 : i32
    %c0_i32_0 = arith.constant 0 : i32
    return %arg0, %c0_i32 : i32, i32
  }
}

</mosaic_0001>

<bundles_post_ra>
// kernel: tpu_custom_call.1
= control target key start
LH: loop header
LB: loop body
LE: loop exit
PB: predicated region body
PF: predicated region fallthrough
CT: control target
= control target key end

     0   :  { %8 = vsyncpa [#allocation3], 0  ;;  %s382_s0 = inlined_call_operand.hbm [shape: f32[2,32,256], index: 0, kind: input, shape index: {}]   ;;  %s383_s1 = inlined_call_operand.hbm [shape: f32[32,128], index: 1, kind: input, shape index: {}]   ;;  %s384_s2 = inlined_call_operand.vmem [shape: f32[1,128], index: 2, kind: input, shape index: {}]   ;;  %s385_s3 = inlined_call_operand.hbm [shape: f32[2,128], index: 3, kind: output, shape index: {}]  }
   0x1   :  { %9 = vsyncpa [#allocation6], 0 }
   0x2   :  { %10 = vsyncpa [#allocation4], 0  ;;  %s341_s12 = smov [#allocation2]  }
   0x3   :  { %s16_s13 = sshll.u32 %s341_s12, 4  ;;  %s17_s13 = int_to_ptr.vmem [resolvable:$true] %s16_s13 }
   0x4   :  { %s283_s14 = scalar_lea.vmem %s17_s13, 2048  ;;  %p288_p1 = scmp.lt.s32.totalorder %s17_s13, %s17_s13 }
   0x5   :  { %p284_p0 = scmp.ne.s32.totalorder %s17_s13, %s283_s14  ;;  %p289_p2 = scmp.lt.s32.totalorder %s283_s14, %s283_s14 }
   0x7   :  { %p290_p3 = por %p289_p2, %p288_p1 }
   0x9   :  { %p291_p4 = pnand %p290_p3, %p284_p0 }
   0xb   :  { %294 = shalt.err (!%p291_p4)
}
   0xc   :  { %s342_s15 = smov 256   ;;  %s343_s16 = smov 16  }
   0xd   :  { %22 = dma.hbm_to_vmem [thread:$0]  %s382_s0, 2048, %s17_s13, [#allocation3], %s342_s15, %s342_s15, %s343_s16  }
   0xe   :  { %s344_s19 = smov [#allocation5]  }
   0xf   :  { %s28_s20 = sshll.u32 %s344_s19, 4  ;;  %s29_s20 = int_to_ptr.vmem [resolvable:$true] %s28_s20 }
  0x10   :  { %s303_s21 = scalar_lea.vmem %s29_s20, 512  ;;  %p308_p6 = scmp.lt.s32.totalorder %s29_s20, %s29_s20 }
  0x11   :  { %p304_p5 = scmp.ne.s32.totalorder %s29_s20, %s303_s21  ;;  %p309_p7 = scmp.lt.s32.totalorder %s303_s21, %s303_s21 }
  0x13   :  { %p310_p8 = por %p309_p7, %p308_p6 }
  0x15   :  { %p311_p9 = pnand %p310_p8, %p304_p5 }
  0x17   :  { %314 = shalt.err (!%p311_p9)
}
  0x18   :  { %s345_s22 = smov 128   ;;  %s346_s23 = smov 8  }
  0x19   :  { %34 = dma.hbm_to_vmem [thread:$0]  %s383_s1, 512, %s29_s20, [#allocation6], %s345_s22, %s345_s22, %s346_s23  }
  0x1a   :  { %335 = dma.done.wait [#allocation3], 2048  }
  0x1b   :  { %336 = vsyncadd [#allocation3], 4294965248 }
  0x1c   :  { %337 = dma.done.wait [#allocation6], 512  }
  0x1d   :  { %338 = vsyncadd [#allocation6], 4294966784  ;;  %v51_v0 = vld [vmem:[#allocation2 + $0x40] sm:$0xff]  ;;  %v52_v1 = vld [vmem:[#allocation2 + $0x48] sm:$0xff]  ;;  %v347_v24 = vmov 0.0   ;;  %vm348_vm0 = vmmov 0   ;;  %v110_v29 = vlaneseq }
  0x1e   :  { %v43_v2 = vld [vmem:[#allocation2] sm:$0xff]  ;;  %v63_v3 = vadd.f32 %v52_v1, %v51_v0  ;;  %v44_v4 = vld [vmem:[#allocation2 + $0x8] sm:$0xff]  ;;  %v53_v5 = vld [vmem:[#allocation2 + $0x50] sm:$0xff]  ;;  %255 = vmatprep.subr.mxu0 %v347_v24  ;;  %263 = vmatprep.mubr.msk.f32.mxu0 %vm348_vm0, %v347_v24  ;;  %vm121_vm1 = vcmask 130112   ;;  %vm128_vm2 = vcmask 195712   ;;  %vm135_vm3 = vcmask 261312  }
  0x1f   :  { %v54_v6 = vld [vmem:[#allocation2 + $0x58] sm:$0xff]  ;;  %v59_v7 = vadd.f32 %v44_v4, %v43_v2  ;;  %v45_v8 = vld [vmem:[#allocation2 + $0x10] sm:$0xff]  ;;  %v55_v12 = vld [vmem:[#allocation2 + $0x60] sm:$0xff]  ;;  %v111_v31 = vand.u32 127, %v110_v29  ;;  %v113_v36 = vshrl.u32 %v110_v29, 7  ;;  %vm156_vm4 = vcmask 1041409  }
  0x20   :  { %v46_v9 = vld [vmem:[#allocation2 + $0x18] sm:$0xff]  ;;  %75 = vadd.xlane.f32.xlu1 %v63_v3  ;;  %v64_v10 = vadd.f32 %v54_v6, %v53_v5  ;;  %v56_v13 = vld [vmem:[#allocation2 + $0x68] sm:$0xff]  ;;  %v47_v14 = vld [vmem:[#allocation2 + $0x20] sm:$0xff]  ;;  %vm158_vm5 = vcmask 261120   ;;  %s349_s26 = smov [#allocation7]  }
  0x21   :  { %67 = vadd.xlane.f32.xlu0 %v59_v7  ;;  %v60_v11 = vadd.f32 %v46_v9, %v45_v8  ;;  %v48_v15 = vld [vmem:[#allocation2 + $0x28] sm:$0xff]  ;;  %v65_v16 = vadd.f32 %v56_v13, %v55_v12  ;;  %v57_v18 = vld [vmem:[#allocation2 + $0x70] sm:$0xff]  ;;  %v58_v19 = vld [vmem:[#allocation2 + $0x78] sm:$0xff]  ;;  %v116_v33 = vadd.s32 4294967288, %v111_v31  ;;  %v123_v35 = vadd.s32 4294967280, %v111_v31  ;;  %s238_s27 = sshll.u32 %s349_s26, 4  ;;  %s239_s27 = int_to_ptr.vmem [resolvable:$true] %s238_s27 }
  0x22   :  { %v61_v17 = vadd.f32 %v48_v15, %v47_v14  ;;  %v49_v20 = vld [vmem:[#allocation2 + $0x30] sm:$0xff]  ;;  %v50_v21 = vld [vmem:[#allocation2 + $0x38] sm:$0xff]  ;;  %v66_v22 = vadd.f32 %v58_v19, %v57_v18  ;;  %v92_v27 = vld [vmem:[#allocation5 + $0x8] sm:$0xff]  ;;  %v130_v40 = vadd.s32 4294967272, %v111_v31  ;;  %v114_v44 = vsub.s32 %v111_v31, %v113_v36  ;;  %s315_s28 = scalar_lea.vmem %s239_s27, 32  ;;  %p320_p11 = scmp.lt.s32.totalorder %s239_s27, %s239_s27 }
  0x23   :  { %v62_v23 = vadd.f32 %v50_v21, %v49_v20  ;;  %v94_v25 = vld [vmem:[#allocation5 + $0x18] sm:$0xff]  ;;  %v93_v26 = vld [vmem:[#allocation5 + $0x10] sm:$0xff]  ;;  %v91_v28 = vld [vmem:[#allocation5] sm:$0xff]  ;;  %v119_v38 = vsub.s32 %v116_v33, %v113_v36  ;;  %v126_v42 = vsub.s32 %v123_v35, %v113_v36  ;;  %p316_p10 = scmp.ne.s32.totalorder %s239_s27, %s315_s28  ;;  %p321_p12 = scmp.lt.s32.totalorder %s315_s28, %s315_s28 }
  0x24   :  { %77 = vadd.xlane.f32.xlu1 %v64_v10  ;;  %256 = vmatpush3.msra.mxu0 %v94_v25  ;;  %v133_v51 = vsub.s32 %v130_v40, %v113_v36  ;;  %v248_v6 = vld [vmem:[%s384_s2] ss:$0 sm:$0xff] }
  0x25   :  { %69 = vadd.xlane.f32.xlu0 %v60_v11  ;;  %257 = vmatprep.subr.mxu0 %v347_v24  ;;  %p322_p13 = por %p321_p12, %p320_p11 }
  0x26   :  { %258 = vmatpush3.msra.mxu0 %v93_v26 }
  0x27   :  { %259 = vmatprep.subr.mxu0 %v347_v24  ;;  %p323_p0 = pnand %p322_p13, %p316_p10 }
  0x28   :  { %79 = vadd.xlane.f32.xlu1 %v65_v16  ;;  %260 = vmatpush3.msra.mxu0 %v92_v27 }
  0x29   :  { %71 = vadd.xlane.f32.xlu0 %v61_v17  ;;  %261 = vmatprep.subr.mxu0 %v347_v24 }
  0x2a   :  { %262 = vmatpush3.msra.mxu0 %v91_v28 }
  0x2c   :  { %81 = vadd.xlane.f32.xlu1 %v66_v22 }
  0x2d   :  { %73 = vadd.xlane.f32.xlu0 %v62_v23 }
  0xa9   :  { %v76_v30 = vpop.xlane.xlu1 %75 }
  0xaa   :  { %v68_v32 = vpop.xlane.xlu0 %67  ;;  %v87_v45 = vmul.f32 0.00390625, %v76_v30 }
  0xab   :  { %v83_v48 = vmul.f32 0.00390625, %v68_v32 }
  0xac   :  { %v140_v55 = vrot.slane %v87_v45, %v114_v44 }
  0xad   :  { %v78_v34 = vpop.xlane.xlu1 %77  ;;  %v115_v59 = vrot.slane %v83_v48, %v114_v44 }
  0xae   :  { %v70_v37 = vpop.xlane.xlu0 %69  ;;  %v88_v39 = vmul.f32 0.00390625, %v78_v34 }
  0xaf   :  { %v84_v41 = vmul.f32 0.00390625, %v70_v37 }
  0xb0   :  { %v144_v50 = vrot.slane %v88_v39, %v119_v38 }
  0xb1   :  { %v80_v43 = vpop.xlane.xlu1 %79  ;;  %v120_v52 = vrot.slane %v84_v41, %v119_v38 }
  0xb2   :  { %v89_v46 = vmul.f32 0.00390625, %v80_v43  ;;  %v72_v47 = vpop.xlane.xlu0 %71  ;;  %v145_v61 = vsel %vm121_vm1, %v144_v50, %v140_v55 }
  0xb3   :  { %v85_v49 = vmul.f32 0.00390625, %v72_v47  ;;  %v122_v63 = vsel %vm121_vm1, %v120_v52, %v115_v59 }
  0xb4   :  { %v149_v53 = vrot.slane %v89_v46, %v126_v42 }
  0xb5   :  { %v82_v54 = vpop.xlane.xlu1 %81  ;;  %v127_v56 = vrot.slane %v85_v49, %v126_v42 }
  0xb6   :  { %v90_v57 = vmul.f32 0.00390625, %v82_v54  ;;  %v74_v58 = vpop.xlane.xlu0 %73  ;;  %v150_v0 = vsel %vm128_vm2, %v149_v53, %v145_v61 }
  0xb7   :  { %v86_v60 = vmul.f32 0.00390625, %v74_v58  ;;  %v129_v2 = vsel %vm128_vm2, %v127_v56, %v122_v63 }
  0xb8   :  { %v154_v62 = vrot.slane %v90_v57, %v133_v51 }
  0xb9   :  { %v134_v1 = vrot.slane %v86_v60, %v133_v51 }
  0xba   :  { %v155_v3 = vsel %vm135_vm3, %v154_v62, %v150_v0 }
  0xbb   :  { %v136_v4 = vsel %vm135_vm3, %v134_v1, %v129_v2 }
  0xbc   :  { %v157_v5 = vsel %vm156_vm4, %v155_v3, %v136_v4 }
  0xbd   :  { %264 = vmatmul.mubr.msk.f32.vlgmr.msra.gmra.mxu0 %vm158_vm5, %v157_v5 }
 0x17d   :  { %v227_v7 = vpop.f32.mrf.mxu0 }
 0x17e   :  { %v228_v8 = vadd.f32 %v248_v6, %v227_v7 }
 0x17f   :  { %v265_v9 = vpop.f32.mrf.mxu0 }
 0x180   :  { %231 = vst [vmem:[#allocation7] sm:$0x3] %v228_v8 }
 0x181   :  { %326 = shalt.err (!%p323_p0)
}
 0x182   :  { %241 = dma.vmem_to_hbm [thread:$0]  %s239_s27, 32, %s385_s3, [#allocation4]  }
 0x183   :  { %339 = dma.done.wait [#allocation4], 32  }
 0x184   :  { %340 = vsyncadd [#allocation4], 4294967264 }
 0x185   :  { %245 = vsyncpa [#allocation3], 1 }
 0x186   :  { %246 = vsyncpa [#allocation6], 1 }
 0x187   :  { %247 = vsyncpa [#allocation4], 1 }

// kernel: tpu_custom_call.1
= control target key start
LH: loop header
LB: loop body
LE: loop exit
PB: predicated region body
PF: predicated region fallthrough
CT: control target
= control target key end

     0   :  { %8 = vsyncpa [#allocation3], 0  ;;  %s382_s0 = inlined_call_operand.hbm [shape: f32[2,32,256], index: 0, kind: input, shape index: {}]   ;;  %s383_s1 = inlined_call_operand.hbm [shape: f32[32,128], index: 1, kind: input, shape index: {}]   ;;  %s384_s2 = inlined_call_operand.vmem [shape: f32[1,128], index: 2, kind: input, shape index: {}]   ;;  %s385_s3 = inlined_call_operand.hbm [shape: f32[2,128], index: 3, kind: output, shape index: {}]  }
   0x1   :  { %9 = vsyncpa [#allocation6], 0 }
   0x2   :  { %10 = vsyncpa [#allocation4], 0  ;;  %s341_s12 = smov [#allocation2]  }
   0x3   :  { %s16_s13 = sshll.u32 %s341_s12, 4  ;;  %s17_s13 = int_to_ptr.vmem [resolvable:$true] %s16_s13 }
   0x4   :  { %s283_s14 = scalar_lea.vmem %s17_s13, 2048  ;;  %p288_p1 = scmp.lt.s32.totalorder %s17_s13, %s17_s13 }
   0x5   :  { %p284_p0 = scmp.ne.s32.totalorder %s17_s13, %s283_s14  ;;  %p289_p2 = scmp.lt.s32.totalorder %s283_s14, %s283_s14 }
   0x7   :  { %p290_p3 = por %p289_p2, %p288_p1 }
   0x9   :  { %p291_p4 = pnand %p290_p3, %p284_p0 }
   0xb   :  { %294 = shalt.err (!%p291_p4)
}
   0xc   :  { %s342_s15 = smov 256   ;;  %s343_s16 = smov 16  }
   0xd   :  { %22 = dma.hbm_to_vmem [thread:$0]  %s382_s0, 2048, %s17_s13, [#allocation3], %s342_s15, %s342_s15, %s343_s16  }
   0xe   :  { %s344_s19 = smov [#allocation5]  }
   0xf   :  { %s28_s20 = sshll.u32 %s344_s19, 4  ;;  %s29_s20 = int_to_ptr.vmem [resolvable:$true] %s28_s20 }
  0x10   :  { %s303_s21 = scalar_lea.vmem %s29_s20, 512  ;;  %p308_p6 = scmp.lt.s32.totalorder %s29_s20, %s29_s20 }
  0x11   :  { %p304_p5 = scmp.ne.s32.totalorder %s29_s20, %s303_s21  ;;  %p309_p7 = scmp.lt.s32.totalorder %s303_s21, %s303_s21 }
  0x13   :  { %p310_p8 = por %p309_p7, %p308_p6 }
  0x15   :  { %p311_p9 = pnand %p310_p8, %p304_p5 }
  0x17   :  { %314 = shalt.err (!%p311_p9)
}
  0x18   :  { %s345_s22 = smov 128   ;;  %s346_s23 = smov 8  }
  0x19   :  { %34 = dma.hbm_to_vmem [thread:$0]  %s383_s1, 512, %s29_s20, [#allocation6], %s345_s22, %s345_s22, %s346_s23  }
  0x1a   :  { %335 = dma.done.wait [#allocation3], 2048  }
  0x1b   :  { %336 = vsyncadd [#allocation3], 4294965248 }
  0x1c   :  { %337 = dma.done.wait [#allocation6], 512  }
  0x1d   :  { %338 = vsyncadd [#allocation6], 4294966784  ;;  %v51_v0 = vld [vmem:[#allocation2 + $0x40] sm:$0xff]  ;;  %v52_v1 = vld [vmem:[#allocation2 + $0x48] sm:$0xff]  ;;  %v347_v24 = vmov 0.0   ;;  %vm348_vm0 = vmmov 0   ;;  %v110_v29 = vlaneseq }
  0x1e   :  { %v43_v2 = vld [vmem:[#allocation2] sm:$0xff]  ;;  %v63_v3 = vadd.f32 %v52_v1, %v51_v0  ;;  %v44_v4 = vld [vmem:[#allocation2 + $0x8] sm:$0xff]  ;;  %v53_v5 = vld [vmem:[#allocation2 + $0x50] sm:$0xff]  ;;  %255 = vmatprep.subr.mxu0 %v347_v24  ;;  %263 = vmatprep.mubr.msk.f32.mxu0 %vm348_vm0, %v347_v24  ;;  %vm121_vm1 = vcmask 130112   ;;  %vm128_vm2 = vcmask 195712   ;;  %vm135_vm3 = vcmask 261312  }
  0x1f   :  { %v54_v6 = vld [vmem:[#allocation2 + $0x58] sm:$0xff]  ;;  %v59_v7 = vadd.f32 %v44_v4, %v43_v2  ;;  %v45_v8 = vld [vmem:[#allocation2 + $0x10] sm:$0xff]  ;;  %v55_v12 = vld [vmem:[#allocation2 + $0x60] sm:$0xff]  ;;  %v111_v31 = vand.u32 127, %v110_v29  ;;  %v113_v36 = vshrl.u32 %v110_v29, 7  ;;  %vm156_vm4 = vcmask 1041409  }
  0x20   :  { %v46_v9 = vld [vmem:[#allocation2 + $0x18] sm:$0xff]  ;;  %75 = vadd.xlane.f32.xlu1 %v63_v3  ;;  %v64_v10 = vadd.f32 %v54_v6, %v53_v5  ;;  %v56_v13 = vld [vmem:[#allocation2 + $0x68] sm:$0xff]  ;;  %v47_v14 = vld [vmem:[#allocation2 + $0x20] sm:$0xff]  ;;  %vm158_vm5 = vcmask 261120   ;;  %s349_s26 = smov [#allocation7]  }
  0x21   :  { %67 = vadd.xlane.f32.xlu0 %v59_v7  ;;  %v60_v11 = vadd.f32 %v46_v9, %v45_v8  ;;  %v48_v15 = vld [vmem:[#allocation2 + $0x28] sm:$0xff]  ;;  %v65_v16 = vadd.f32 %v56_v13, %v55_v12  ;;  %v57_v18 = vld [vmem:[#allocation2 + $0x70] sm:$0xff]  ;;  %v58_v19 = vld [vmem:[#allocation2 + $0x78] sm:$0xff]  ;;  %v116_v33 = vadd.s32 4294967288, %v111_v31  ;;  %v123_v35 = vadd.s32 4294967280, %v111_v31  ;;  %s238_s27 = sshll.u32 %s349_s26, 4  ;;  %s239_s27 = int_to_ptr.vmem [resolvable:$true] %s238_s27 }
  0x22   :  { %v61_v17 = vadd.f32 %v48_v15, %v47_v14  ;;  %v49_v20 = vld [vmem:[#allocation2 + $0x30] sm:$0xff]  ;;  %v50_v21 = vld [vmem:[#allocation2 + $0x38] sm:$0xff]  ;;  %v66_v22 = vadd.f32 %v58_v19, %v57_v18  ;;  %v92_v27 = vld [vmem:[#allocation5 + $0x8] sm:$0xff]  ;;  %v130_v40 = vadd.s32 4294967272, %v111_v31  ;;  %v114_v44 = vsub.s32 %v111_v31, %v113_v36  ;;  %s315_s28 = scalar_lea.vmem %s239_s27, 32  ;;  %p320_p11 = scmp.lt.s32.totalorder %s239_s27, %s239_s27 }
  0x23   :  { %v62_v23 = vadd.f32 %v50_v21, %v49_v20  ;;  %v94_v25 = vld [vmem:[#allocation5 + $0x18] sm:$0xff]  ;;  %v93_v26 = vld [vmem:[#allocation5 + $0x10] sm:$0xff]  ;;  %v91_v28 = vld [vmem:[#allocation5] sm:$0xff]  ;;  %v119_v38 = vsub.s32 %v116_v33, %v113_v36  ;;  %v126_v42 = vsub.s32 %v123_v35, %v113_v36  ;;  %p316_p10 = scmp.ne.s32.totalorder %s239_s27, %s315_s28  ;;  %p321_p12 = scmp.lt.s32.totalorder %s315_s28, %s315_s28 }
  0x24   :  { %77 = vadd.xlane.f32.xlu1 %v64_v10  ;;  %256 = vmatpush3.msra.mxu0 %v94_v25  ;;  %v133_v51 = vsub.s32 %v130_v40, %v113_v36  ;;  %v248_v6 = vld [vmem:[%s384_s2] ss:$0 sm:$0xff] }
  0x25   :  { %69 = vadd.xlane.f32.xlu0 %v60_v11  ;;  %257 = vmatprep.subr.mxu0 %v347_v24  ;;  %p322_p13 = por %p321_p12, %p320_p11 }
  0x26   :  { %258 = vmatpush3.msra.mxu0 %v93_v26 }
  0x27   :  { %259 = vmatprep.subr.mxu0 %v347_v24  ;;  %p323_p0 = pnand %p322_p13, %p316_p10 }
  0x28   :  { %79 = vadd.xlane.f32.xlu1 %v65_v16  ;;  %260 = vmatpush3.msra.mxu0 %v92_v27 }
  0x29   :  { %71 = vadd.xlane.f32.xlu0 %v61_v17  ;;  %261 = vmatprep.subr.mxu0 %v347_v24 }
  0x2a   :  { %262 = vmatpush3.msra.mxu0 %v91_v28 }
  0x2c   :  { %81 = vadd.xlane.f32.xlu1 %v66_v22 }
  0x2d   :  { %73 = vadd.xlane.f32.xlu0 %v62_v23 }
  0xa9   :  { %v76_v30 = vpop.xlane.xlu1 %75 }
  0xaa   :  { %v68_v32 = vpop.xlane.xlu0 %67  ;;  %v87_v45 = vmul.f32 0.00390625, %v76_v30 }
  0xab   :  { %v83_v48 = vmul.f32 0.00390625, %v68_v32 }
  0xac   :  { %v140_v55 = vrot.slane %v87_v45, %v114_v44 }
  0xad   :  { %v78_v34 = vpop.xlane.xlu1 %77  ;;  %v115_v59 = vrot.slane %v83_v48, %v114_v44 }
  0xae   :  { %v70_v37 = vpop.xlane.xlu0 %69  ;;  %v88_v39 = vmul.f32 0.00390625, %v78_v34 }
  0xaf   :  { %v84_v41 = vmul.f32 0.00390625, %v70_v37 }
  0xb0   :  { %v144_v50 = vrot.slane %v88_v39, %v119_v38 }
  0xb1   :  { %v80_v43 = vpop.xlane.xlu1 %79  ;;  %v120_v52 = vrot.slane %v84_v41, %v119_v38 }
  0xb2   :  { %v89_v46 = vmul.f32 0.00390625, %v80_v43  ;;  %v72_v47 = vpop.xlane.xlu0 %71  ;;  %v145_v61 = vsel %vm121_vm1, %v144_v50, %v140_v55 }
  0xb3   :  { %v85_v49 = vmul.f32 0.00390625, %v72_v47  ;;  %v122_v63 = vsel %vm121_vm1, %v120_v52, %v115_v59 }
  0xb4   :  { %v149_v53 = vrot.slane %v89_v46, %v126_v42 }
  0xb5   :  { %v82_v54 = vpop.xlane.xlu1 %81  ;;  %v127_v56 = vrot.slane %v85_v49, %v126_v42 }
  0xb6   :  { %v90_v57 = vmul.f32 0.00390625, %v82_v54  ;;  %v74_v58 = vpop.xlane.xlu0 %73  ;;  %v150_v0 = vsel %vm128_vm2, %v149_v53, %v145_v61 }
  0xb7   :  { %v86_v60 = vmul.f32 0.00390625, %v74_v58  ;;  %v129_v2 = vsel %vm128_vm2, %v127_v56, %v122_v63 }
  0xb8   :  { %v154_v62 = vrot.slane %v90_v57, %v133_v51 }
  0xb9   :  { %v134_v1 = vrot.slane %v86_v60, %v133_v51 }
  0xba   :  { %v155_v3 = vsel %vm135_vm3, %v154_v62, %v150_v0 }
  0xbb   :  { %v136_v4 = vsel %vm135_vm3, %v134_v1, %v129_v2 }
  0xbc   :  { %v157_v5 = vsel %vm156_vm4, %v155_v3, %v136_v4 }
  0xbd   :  { %264 = vmatmul.mubr.msk.f32.vlgmr.msra.gmra.mxu0 %vm158_vm5, %v157_v5 }
 0x17d   :  { %v227_v7 = vpop.f32.mrf.mxu0 }
 0x17e   :  { %v228_v8 = vadd.f32 %v248_v6, %v227_v7 }
 0x17f   :  { %v265_v9 = vpop.f32.mrf.mxu0 }
 0x180   :  { %231 = vst [vmem:[#allocation7] sm:$0x3] %v228_v8 }
 0x181   :  { %326 = shalt.err (!%p323_p0)
}
 0x182   :  { %241 = dma.vmem_to_hbm [thread:$0]  %s239_s27, 32, %s385_s3, [#allocation4]  }
 0x183   :  { %339 = dma.done.wait [#allocation4], 32  }
 0x184   :  { %340 = vsyncadd [#allocation4], 4294967264 }
 0x185   :  { %245 = vsyncpa [#allocation3], 1 }
 0x186   :  { %246 = vsyncpa [#allocation6], 1 }
 0x187   :  { %247 = vsyncpa [#allocation4], 1 }

</bundles_post_ra>
